<compile_context>
chip_gen: v7x
topology: tpu7x:2x2x1
jax: 0.10.0
libtpu: 0.0.40
codegen_flags: <defaults>
</compile_context>

<pallas_src>
import math
import functools
from typing import Sequence, Union

import jax
import jax.numpy as jnp
from jax.experimental import pallas as pl
from jax.experimental.pallas import tpu as pltpu


def _round_up(x: int, m: int) -> int:
    return ((x + m - 1) // m) * m


def _cdiv(a: int, b: int) -> int:
    return (a + b - 1) // b


def _sublane(dtype) -> int:
    # Packed sublane multiple: 8 for f32, 16 for bf16, 32 for int8/fp8.
    return max(8, 32 // max(1, jnp.dtype(dtype).itemsize))


def _vmem_capacity_bytes() -> int:
    try:
        return int(pltpu.get_tpu_info().vmem_capacity_bytes)
    except Exception:
        # Conservative fallback (v7x per-TC VMEM); safe on every generation.
        return 64 * 1024 * 1024


def _hbm_bw_bytes_per_s() -> float:
    try:
        kind = jax.devices()[0].device_kind.lower()
    except Exception:
        return 1.2e12
    if "v5" in kind:
        return 0.8e12
    if "v6" in kind:
        return 1.4e12
    if "v7" in kind or "7x" in kind:
        return 3.2e12
    return 1.2e12


_STEP_OVERHEAD_S = 0.35e-6   # measured per-grid-step pipeline overhead


# ---------------------------------------------------------------------------
# Kernel 1: slab-only masked fill along time (dim == 1).
# Grid: (B, 2*num_mask).  Each step handles one (1, slab, F) tile whose block
# index along T comes from the scalar-prefetched `blk_ref`.  The spec operand
# is aliased to the output, so blocks never visited keep their original values.
# Every visited tile applies the union of ALL masks of its batch item, so
# overlapping/repeated slabs write identical data (idempotent, race-free).
# ---------------------------------------------------------------------------
def _time_slab_kernel(num_mask, slab,
                      pos_ref, len_ref, blk_ref, fill_ref,
                      spec_ref, out_ref):
    b = pl.program_id(0)
    m = pl.program_id(1)
    nm2 = 2 * num_mask
    row0 = blk_ref[b * nm2 + m] * slab                 # global first row of slab
    _, S, _ = spec_ref.shape                           # (1, slab, F)
    idx = jax.lax.broadcasted_iota(jnp.int32, (1, S, 1), 1) + row0
    masked = jnp.zeros((1, S, 1), dtype=jnp.bool_)
    for k in range(num_mask):
        pos = pos_ref[b * num_mask + k]
        ln = len_ref[b * num_mask + k]
        masked = jnp.logical_or(
            masked, jnp.logical_and(pos <= idx, idx < pos + ln))
    fill = fill_ref[b].astype(spec_ref.dtype)
    out_ref[...] = jnp.where(masked, fill, spec_ref[...])


def _masked_fill_time_slabs(spec, mask_pos, mask_len, fill, num_mask, slab):
    B, T, F = spec.shape
    nblk = _cdiv(T, slab)
    nm2 = 2 * num_mask

    # Slab containing the mask start; second slab only if the mask actually
    # crosses a slab boundary (len <= max_w <= slab => at most 2 slabs).
    blk0 = (mask_pos // slab).astype(jnp.int32)
    end = mask_pos + jnp.maximum(mask_len, 1) - 1          # last masked row
    blk_last = jnp.minimum(end // slab, nblk - 1).astype(jnp.int32)
    blk1 = jnp.where(mask_len > 0, blk_last, blk0).astype(jnp.int32)
    blk = jnp.concatenate([blk0, blk1], axis=-1)            # (B, 2*num_mask)
    # Sort so equal block indices are adjacent in grid order -> Pallas elides
    # the duplicate input DMA and keeps the output block resident.
    blk = jnp.sort(blk, axis=-1)

    # Flatten scalar-prefetch operands to 1D (cheap SMEM padding).
    blk_flat = blk.reshape(B * nm2).astype(jnp.int32)
    pos_flat = mask_pos.reshape(B * num_mask).astype(jnp.int32)
    len_flat = mask_len.reshape(B * num_mask).astype(jnp.int32)
    fill = fill.astype(jnp.float32)

    kernel = functools.partial(_time_slab_kernel, num_mask, slab)
    return pl.pallas_call(
        kernel,
        out_shape=jax.ShapeDtypeStruct((B, T, F), spec.dtype),
        grid_spec=pltpu.PrefetchScalarGridSpec(
            num_scalar_prefetch=4,                    # pos, len, blk, fill
            grid=(B, nm2),
            in_specs=[pl.BlockSpec(
                (1, slab, F),
                lambda b, m, pos, ln, bk, fl, _n=nm2: (b, bk[b * _n + m], 0))],
            out_specs=pl.BlockSpec(
                (1, slab, F),
                lambda b, m, pos, ln, bk, fl, _n=nm2: (b, bk[b * _n + m], 0)),
        ),
        # spec is call-arg index 4 (after the 4 scalar-prefetch operands);
        # alias it to output 0 so untouched regions are never copied.  Under
        # jit with a donatable input this avoids moving untouched HBM.
        input_output_aliases={4: 0},
        compiler_params=pltpu.CompilerParams(
            dimension_semantics=("parallel", "arbitrary")),
    )(pos_flat, len_flat, blk_flat, fill, spec)


# ---------------------------------------------------------------------------
# Kernel 2: tiled read-modify-write masked fill (freq masking, or time masking
# when a streaming full pass is cheaper than the slab path).
# ---------------------------------------------------------------------------
def _rmw_mask_kernel(num_mask, dim,
                     pos_ref, len_ref, fill_ref,
                     spec_ref, out_ref):
    b = pl.program_id(0)
    _, S, F = spec_ref.shape
    if dim == 1:
        idx = (jax.lax.broadcasted_iota(jnp.int32, (1, S, 1), 1)
               + pl.program_id(1) * S)
        masked = jnp.zeros((1, S, 1), dtype=jnp.bool_)
    else:  # dim == 2
        idx = jax.lax.broadcasted_iota(jnp.int32, (1, 1, F), 2)
        masked = jnp.zeros((1, 1, F), dtype=jnp.bool_)
    for k in range(num_mask):
        pos = pos_ref[b * num_mask + k]
        ln = len_ref[b * num_mask + k]
        masked = jnp.logical_or(
            masked, jnp.logical_and(pos <= idx, idx < pos + ln))
    fill = fill_ref[b].astype(spec_ref.dtype)
    out_ref[...] = jnp.where(masked, fill, spec_ref[...])


def _rmw_tile(T: int, F: int, dtype):
    """Pick a big streaming tile (~4 MiB/buffer) + an explicit VMEM limit."""
    itemsize = jnp.dtype(dtype).itemsize
    sub = _sublane(dtype)
    vmem_cap = _vmem_capacity_bytes()
    slack = 2 * 1024 * 1024
    # 2 operands x 2 pipeline buffers; never exceed physical VMEM w/ headroom.
    per_buf = min(4 * 1024 * 1024, max(1, (vmem_cap // 2 - slack) // 4))
    row_bytes = max(1, F * itemsize)
    tT = (per_buf // row_bytes) // sub * sub
    tT = max(sub, tT)
    if tT >= T:
        tT = T                                   # full-extent block is allowed
    tile_bytes = tT * F * itemsize
    vmem_limit = max(4 * tile_bytes + slack, 32 * 1024 * 1024)
    vmem_limit = min(vmem_limit,
                     max(vmem_cap - 4 * 1024 * 1024, 4 * tile_bytes + slack))
    vmem_limit = int(min(vmem_limit, vmem_cap))
    return tT, vmem_limit


def _masked_fill_rmw(spec, mask_pos, mask_len, fill, dim, num_mask):
    B, T, F = spec.shape
    tT, vmem_limit = _rmw_tile(T, F, spec.dtype)
    nT = _cdiv(T, tT)
    pos_flat = mask_pos.reshape(B * num_mask).astype(jnp.int32)
    len_flat = mask_len.reshape(B * num_mask).astype(jnp.int32)
    fill = fill.astype(jnp.float32)
    kernel = functools.partial(_rmw_mask_kernel, num_mask, dim)
    return pl.pallas_call(
        kernel,
        out_shape=jax.ShapeDtypeStruct((B, T, F), spec.dtype),
        grid_spec=pltpu.PrefetchScalarGridSpec(
            num_scalar_prefetch=3,                    # pos, len, fill
            grid=(B, nT),
            in_specs=[pl.BlockSpec((1, tT, F), lambda b, t, *_: (b, t, 0))],
            out_specs=pl.BlockSpec((1, tT, F), lambda b, t, *_: (b, t, 0)),
        ),
        compiler_params=pltpu.CompilerParams(
            dimension_semantics=("parallel", "parallel"),
            vmem_limit_bytes=vmem_limit),
    )(pos_flat, len_flat, fill, spec)


def _masked_fill(spec, mask_pos, mask_len, fill, dim, num_mask, max_w):
    """spec: (B,T,F); mask_pos/mask_len: (B,num_mask) i32; fill: (B,) f32."""
    B, T, F = spec.shape
    itemsize = jnp.dtype(spec.dtype).itemsize
    if dim == 1 and max_w > 0:
        sub = _sublane(spec.dtype)
        slab = min(_round_up(max_w, sub), T)
        if slab < T:
            # Cost model: serial per-step overhead + bytes moved (per gen BW).
            bw = _hbm_bw_bytes_per_s()
            nblk = _cdiv(T, slab)
            slab_steps = min(2 * num_mask, nblk)          # worst-case distinct slabs
            slab_cost = B * slab_steps * (
                _STEP_OVERHEAD_S + 2.0 * slab * F * itemsize / bw)
            tT, _ = _rmw_tile(T, F, spec.dtype)
            rmw_cost = (2.0 * B * T * F * itemsize / bw
                        + B * _cdiv(T, tT) * _STEP_OVERHEAD_S)
            if slab_cost < rmw_cost:
                return _masked_fill_time_slabs(spec, mask_pos, mask_len, fill,
                                               num_mask, slab)
    return _masked_fill_rmw(spec, mask_pos, mask_len, fill, dim, num_mask)


class MaskAlongAxisVariableMaxWidthFused:
    """JAX/Pallas port of the PyTorch module (forward-pass semantics)."""

    def __init__(self,
                 mask_width_ratio_range: Union[float, Sequence[float]] = (0.0, 0.05),
                 num_mask: int = 2,
                 dim: Union[int, str] = "time",
                 replace_with_zero: bool = True):
        if isinstance(mask_width_ratio_range, float):
            mask_width_ratio_range = (0.0, mask_width_ratio_range)
        if len(mask_width_ratio_range) != 2:
            raise TypeError(
                "mask_width_ratio_range must be a tuple of float and float "
                f"values: {mask_width_ratio_range}")
        assert mask_width_ratio_range[1] > mask_width_ratio_range[0]
        if isinstance(dim, str):
            if dim == "time":
                dim = 1
            elif dim == "freq":
                dim = 2
            else:
                raise ValueError("dim must be int, 'time' or 'freq'")
        self.mask_width_ratio_range = mask_width_ratio_range
        self.num_mask = num_mask
        self.dim = dim
        self.replace_with_zero = replace_with_zero

    def __call__(self, spec, spec_lengths=None, *, key):
        """spec: list of arrays (Batch, Length, Freq) (or 4-D, flattened)."""
        max_seq_len = spec[0].shape[self.dim]
        min_mask_width = max(0, math.floor(
            max_seq_len * self.mask_width_ratio_range[0]))
        max_mask_width = min(max_seq_len, math.floor(
            max_seq_len * self.mask_width_ratio_range[1]))
        self.mask_width_range = (min_mask_width, max_mask_width)

        if max_mask_width <= min_mask_width:
            return spec, spec_lengths

        org_sizes = [s.shape for s in spec]
        feats = [s.reshape(-1, s.shape[-2], s.shape[-1]) if s.ndim == 4 else s
                 for s in spec]
        B = feats[0].shape[0]
        D = feats[0].shape[self.dim]

        k_len, k_pos = jax.random.split(key)
        mask_length = jax.random.randint(
            k_len, (B, self.num_mask), min_mask_width, max_mask_width,
            dtype=jnp.int32)
        max_pos = jnp.maximum(1, D - jnp.max(mask_length))
        mask_pos = jax.random.randint(
            k_pos, (B, self.num_mask), 0, max_pos, dtype=jnp.int32)

        same = (len(feats) > 1 and
                all(f.shape == feats[0].shape and f.dtype == feats[0].dtype
                    for f in feats))
        if same:
            # Batch the whole feats list into one pallas_call (megacore/launch
            # amortisation).  Per-feat mean fill rides as a per-batch scalar.
            n = len(feats)
            big = jnp.concatenate(feats, axis=0)               # (n*B, T, F)
            pos_b = jnp.tile(mask_pos, (n, 1))
            len_b = jnp.tile(mask_length, (n, 1))
            if self.replace_with_zero:
                fill_b = jnp.zeros((n * B,), jnp.float32)
            else:
                # TODO(synk): mean is an extra full HBM read pass per feat;
                # cache/fuse upstream stats if available.
                fill_b = jnp.concatenate(
                    [jnp.full((B,), jnp.mean(f), jnp.float32) for f in feats])
            y = _masked_fill(big, pos_b, len_b, fill_b, self.dim,
                             self.num_mask, max_mask_width)
            out = [y[i * B:(i + 1) * B].reshape(org)
                   for i, org in enumerate(org_sizes)]
            return out, spec_lengths

        out = []
        for feat, org in zip(feats, org_sizes):
            if self.replace_with_zero:
                fill = jnp.zeros((feat.shape[0],), jnp.float32)
            else:
                fill = jnp.full((feat.shape[0],), jnp.mean(feat), jnp.float32)
            y = _masked_fill(feat, mask_pos, mask_length, fill,
                             self.dim, self.num_mask, max_mask_width)
            out.append(y.reshape(org))
        return out, spec_lengths


def _reference(feat, mask_pos, mask_len, dim, fill):
    """Pure-jnp reference for correctness checking."""
    D = feat.shape[dim]
    aran = jnp.arange(D)[None, None, :]                      # (1, 1, D)
    m = (mask_pos[:, :, None] <= aran) & (aran < mask_pos[:, :, None]
                                          + mask_len[:, :, None])
    m = jnp.any(m, axis=1)                                    # (B, D)
    m = m[:, :, None] if dim == 1 else m[:, None, :]
    return jnp.where(m, fill, feat)


if __name__ == "__main__":
    key = jax.random.PRNGKey(0)
    k_data, k_mask, k_data2, k_mask2, k_data3 = jax.random.split(key, 5)

    # ------------------------------------------------------------------
    # Test 1: time masking, zero fill, a two-element feats list (exercises the
    # batched single-call path; dispatch picks whichever path is cheaper).
    # ------------------------------------------------------------------
    B, T, F = 2, 64, 128
    x = jax.random.normal(k_data, (B, T, F), dtype=jnp.float32)
    xs = [x, 2.0 * x]

    mod = MaskAlongAxisVariableMaxWidthFused(
        mask_width_ratio_range=(0.0, 0.1), num_mask=2, dim="time",
        replace_with_zero=True)

    # Re-derive the same random masks for an independent reference BEFORE the
    # kernel call (the slab kernel aliases / may donate its input buffer).
    min_w = max(0, math.floor(T * 0.0))
    max_w = min(T, math.floor(T * 0.1))
    k_len, k_pos = jax.random.split(k_mask)
    mask_length = jax.random.randint(k_len, (B, 2), min_w, max_w, dtype=jnp.int32)
    max_pos = jnp.maximum(1, T - jnp.max(mask_length))
    mask_pos = jax.random.randint(k_pos, (B, 2), 0, max_pos, dtype=jnp.int32)
    ref_a = jax.block_until_ready(_reference(x, mask_pos, mask_length, 1, 0.0))
    ref_b = jax.block_until_ready(_reference(2.0 * x, mask_pos, mask_length, 1, 0.0))

    (out_list, _) = mod(xs, None, key=k_mask)
    out_a = jax.block_until_ready(out_list[0])
    out_b = jax.block_until_ready(out_list[1])

    assert out_a.shape == (B, T, F) and out_a.dtype == jnp.float32
    assert jnp.allclose(out_a, ref_a), "time-mask mismatch vs reference (feat 0)"
    assert jnp.allclose(out_b, ref_b), "time-mask mismatch vs reference (feat 1)"

    # ------------------------------------------------------------------
    # Test 2: freq masking, mean fill -> tiled read-modify-write kernel.
    # ------------------------------------------------------------------
    B2, T2, F2 = 2, 40, 80
    x2 = jax.random.normal(k_data2, (B2, T2, F2), dtype=jnp.float32)

    mod2 = MaskAlongAxisVariableMaxWidthFused(
        mask_width_ratio_range=(0.0, 0.2), num_mask=2, dim="freq",
        replace_with_zero=False)

    min_w2 = max(0, math.floor(F2 * 0.0))
    max_w2 = min(F2, math.floor(F2 * 0.2))
    k_len2, k_pos2 = jax.random.split(k_mask2)
    ml2 = jax.random.randint(k_len2, (B2, 2), min_w2, max_w2, dtype=jnp.int32)
    mp2 = jax.random.randint(k_pos2, (B2, 2), 0,
                             jnp.maximum(1, F2 - jnp.max(ml2)), dtype=jnp.int32)
    fill2 = jnp.mean(x2)
    ref2 = jax.block_until_ready(_reference(x2, mp2, ml2, 2, fill2))

    (out2_list, _) = mod2([x2], None, key=k_mask2)
    out2 = jax.block_until_ready(out2_list[0])

    assert out2.shape == (B2, T2, F2) and out2.dtype == jnp.float32
    assert jnp.allclose(out2, ref2), "freq-mask mismatch vs reference"

    # ------------------------------------------------------------------
    # Test 3: slab kernel exercised directly (boundary-straddling masks, a
    # repeated slab index, and T not divisible by the slab -> partial block).
    # ------------------------------------------------------------------
    B3, T3, F3 = 2, 100, 128
    x3 = jax.random.normal(k_data3, (B3, T3, F3), dtype=jnp.float32)
    pos3 = jnp.array([[10, 60], [30, 90]], dtype=jnp.int32)
    len3 = jnp.array([[12, 5], [8, 10]], dtype=jnp.int32)
    fill3 = jnp.zeros((B3,), jnp.float32)
    slab3 = 16  # round_up(max_width=12, sublane=8) rounded to 16 for coverage
    ref3 = jax.block_until_ready(_reference(x3, pos3, len3, 1, 0.0))
    out3 = jax.block_until_ready(
        _masked_fill_time_slabs(x3, pos3, len3, fill3, 2, slab3))
    assert jnp.allclose(out3, ref3), "slab-kernel mismatch vs reference"

    print("KERNEL_OK")
</pallas_src>

<mosaic_0001>
module attributes {stable_mosaic.version = 11 : i64} {
  func.func @_rmw_mask_kernel(%arg0: i32, %arg1: i32, %arg2: memref<8xi32, #tpu.memory_space<smem>>, %arg3: memref<8xi32, #tpu.memory_space<smem>>, %arg4: memref<4xf32, #tpu.memory_space<smem>>, %arg5: memref<1x64x128xf32, #tpu.memory_space<vmem>>, %arg6: memref<1x64x128xf32, #tpu.memory_space<vmem>>) attributes {dimension_semantics = [#tpu.dimension_semantics<parallel>, #tpu.dimension_semantics<parallel>], iteration_bounds = array<i64: 4, 1>, scalar_prefetch = 3 : i64, scratch_operands = 0 : i64, tpu.core_type = #tpu.core_type<tc>, window_params = [{transform_indices = @transform_0, window_bounds = array<i64: 1, 64, 128>}, {transform_indices = @transform_1, window_bounds = array<i64: 1, 64, 128>}]} {
    %0 = tpu.iota {dimensions = array<i32: 1>} : vector<1x64x1xi32>
    %c64_i32 = arith.constant 64 : i32
    %1 = arith.muli %arg1, %c64_i32 : i32
    %2 = vector.broadcast %1 : i32 to vector<1x64x1xi32>
    %3 = arith.addi %0, %2 : vector<1x64x1xi32>
    %false = arith.constant false
    %4 = vector.broadcast %false : i1 to vector<1x64x1xi1>
    %c2_i32 = arith.constant 2 : i32
    %5 = arith.muli %arg0, %c2_i32 : i32
    %c0_i32 = arith.constant 0 : i32
    %6 = arith.addi %5, %c0_i32 : i32
    %7 = arith.index_cast %6 : i32 to index
    %8 = memref.load %arg2[%7] : memref<8xi32, #tpu.memory_space<smem>>
    %c2_i32_0 = arith.constant 2 : i32
    %9 = arith.muli %arg0, %c2_i32_0 : i32
    %c0_i32_1 = arith.constant 0 : i32
    %10 = arith.addi %9, %c0_i32_1 : i32
    %11 = arith.index_cast %10 : i32 to index
    %12 = memref.load %arg3[%11] : memref<8xi32, #tpu.memory_space<smem>>
    %13 = vector.broadcast %8 : i32 to vector<1x64x1xi32>
    %14 = arith.cmpi sle, %13, %3 : vector<1x64x1xi32>
    %15 = arith.addi %8, %12 : i32
    %16 = vector.broadcast %15 : i32 to vector<1x64x1xi32>
    %17 = arith.cmpi slt, %3, %16 : vector<1x64x1xi32>
    %18 = arith.andi %14, %17 : vector<1x64x1xi1>
    %19 = arith.ori %4, %18 : vector<1x64x1xi1>
    %c2_i32_2 = arith.constant 2 : i32
    %20 = arith.muli %arg0, %c2_i32_2 : i32
    %c1_i32 = arith.constant 1 : i32
    %21 = arith.addi %20, %c1_i32 : i32
    %22 = arith.index_cast %21 : i32 to index
    %23 = memref.load %arg2[%22] : memref<8xi32, #tpu.memory_space<smem>>
    %c2_i32_3 = arith.constant 2 : i32
    %24 = arith.muli %arg0, %c2_i32_3 : i32
    %c1_i32_4 = arith.constant 1 : i32
    %25 = arith.addi %24, %c1_i32_4 : i32
    %26 = arith.index_cast %25 : i32 to index
    %27 = memref.load %arg3[%26] : memref<8xi32, #tpu.memory_space<smem>>
    %28 = vector.broadcast %23 : i32 to vector<1x64x1xi32>
    %29 = arith.cmpi sle, %28, %3 : vector<1x64x1xi32>
    %30 = arith.addi %23, %27 : i32
    %31 = vector.broadcast %30 : i32 to vector<1x64x1xi32>
    %32 = arith.cmpi slt, %3, %31 : vector<1x64x1xi32>
    %33 = arith.andi %29, %32 : vector<1x64x1xi1>
    %34 = arith.ori %19, %33 : vector<1x64x1xi1>
    %35 = arith.index_cast %arg0 : i32 to index
    %36 = memref.load %arg4[%35] : memref<4xf32, #tpu.memory_space<smem>>
    %c0 = arith.constant 0 : index
    %c0_5 = arith.constant 0 : index
    %c0_6 = arith.constant 0 : index
    %37 = vector.load %arg5[%c0, %c0_5, %c0_6] : memref<1x64x128xf32, #tpu.memory_space<vmem>>, vector<1x64x128xf32>
    %38 = vector.shape_cast %34 : vector<1x64x1xi1> to vector<1x64x1xi1>
    %39 = vector.broadcast %38 : vector<1x64x1xi1> to vector<1x64x128xi1>
    %40 = vector.broadcast %36 : f32 to vector<1x64x128xf32>
    %41 = arith.select %39, %40, %37 : vector<1x64x128xi1>, vector<1x64x128xf32>
    %c0_7 = arith.constant 0 : index
    %c0_8 = arith.constant 0 : index
    %c0_9 = arith.constant 0 : index
    %42 = vector.load %arg6[%c0_7, %c0_8, %c0_9] : memref<1x64x128xf32, #tpu.memory_space<vmem>>, vector<1x64x128xf32>
    tpu.vector_store %arg6[%c0_7, %c0_8, %c0_9], %41 {strides = array<i32>} : memref<1x64x128xf32, #tpu.memory_space<vmem>>, vector<1x64x128xf32>,
    return
  }
  func.func @transform_0(%arg0: i32, %arg1: i32, %arg2: memref<8xi32, #tpu.memory_space<smem>>, %arg3: memref<8xi32, #tpu.memory_space<smem>>, %arg4: memref<4xf32, #tpu.memory_space<smem>>) -> (i32, i32, i32) {
    %c0_i32 = arith.constant 0 : i32
    %c0_i32_0 = arith.constant 0 : i32
    return %arg0, %arg1, %c0_i32 : i32, i32, i32
  }
  func.func @transform_1(%arg0: i32, %arg1: i32, %arg2: memref<8xi32, #tpu.memory_space<smem>>, %arg3: memref<8xi32, #tpu.memory_space<smem>>, %arg4: memref<4xf32, #tpu.memory_space<smem>>) -> (i32, i32, i32) {
    %c0_i32 = arith.constant 0 : i32
    %c0_i32_0 = arith.constant 0 : i32
    return %arg0, %arg1, %c0_i32 : i32, i32, i32
  }
}

</mosaic_0001>

<bundles_post_ra>
// kernel: tpu_custom_call.1
= control target key start
LH: loop header
LB: loop body
LE: loop exit
PB: predicated region body
PF: predicated region fallthrough
CT: control target
= control target key end

     0   :  { %s966_s0 = inlined_call_operand.hbm [shape: s32[8], index: 0, kind: input, shape index: {}]   ;;  %s967_s3 = inlined_call_operand.hbm [shape: f32[4,64,128], index: 3, kind: input, shape index: {}]   ;;  %s968_s4 = inlined_call_operand.hbm [shape: f32[4,64,128], index: 4, kind: output, shape index: {}]   ;;  %s969_s1 = inlined_call_operand.vmem [shape: s32[8], index: 1, kind: input, shape index: {}]   ;;  %s970_s2 = inlined_call_operand.vmem [shape: f32[4], index: 2, kind: input, shape index: {}]  }
   0x1   :  { %s489_s17 = scalar_lea.hbm %s966_s0, 16 }
   0x2   :  { %p490_p0 = scmp.ne.s32.totalorder %s966_s0, %s489_s17  ;;  %p493_p1 = scmp.lt.u32.totalorder %s489_s17, %s966_s0 }
   0x4   :  { %p495_p2 = pnand %p493_p1, %p490_p0 }
   0x6   :  { %498 = shalt.err (!%p495_p2)  }
   0x7   :  { %s639_s22 = smov [#allocation3]   ;;  %s11_s27 = sshll.u32 %s969_s1, 4  ;;  %s12_s27 = int_to_ptr.vmem [resolvable:$true] %s11_s27 }
   0x8   :  { %10 = dma.hbm_to_smem %s966_s0, 16, %s639_s22, [#allocation2] }
   0x9   :  { %s15_s30 = sshll.u32 %s970_s2, 4  ;;  %s499_s5 = scalar_lea.vmem %s12_s27, 16  ;;  %s16_s30 = int_to_ptr.vmem [resolvable:$true] %s15_s30 }
   0xa   :  { %p500_p3 = scmp.ne.s32.totalorder %s12_s27, %s499_s5  ;;  %p504_p4 = scmp.lt.s32.totalorder %s12_s27, %s12_s27 }
   0xb   :  { %p505_p5 = scmp.lt.s32.totalorder %s499_s5, %s499_s5 }
   0xd   :  { %p506_p6 = por %p505_p5, %p504_p4 }
   0xf   :  { %p507_p7 = pnand %p506_p6, %p500_p3 }
  0x11   :  { %510 = shalt.err (!%p507_p7)  }
  0x12   :  { %s640_s6 = smov [#allocation4]   ;;  %s511_s0 = scalar_lea.vmem %s16_s30, 16 }
  0x13   :  { %14 = dma.vmem_to_smem %s12_s27, 16, %s640_s6, [#allocation2] }
  0x14   :  { %p512_p8 = scmp.ne.s32.totalorder %s16_s30, %s511_s0  ;;  %p516_p9 = scmp.lt.s32.totalorder %s16_s30, %s16_s30 }
  0x15   :  { %p517_p10 = scmp.lt.s32.totalorder %s511_s0, %s511_s0 }
  0x17   :  { %p518_p11 = por %p517_p10, %p516_p9 }
  0x19   :  { %p519_p12 = pnand %p518_p11, %p512_p8 }
  0x1b   :  { %522 = shalt.err (!%p519_p12)  }
  0x1c   :  { %s641_s1 = smov [#allocation5]  }
  0x1d   :  { %18 = dma.vmem_to_smem %s16_s30, 16, %s641_s1, [#allocation2] }
  0x1e   :  { %605 = dma.done.wait [#allocation2], 48 }
  0x1f   :  { %606 = vsyncadd [#allocation2], 4294967248 }
  0x20   :  { %20 = sfence }
  0x21   :  { %21 = vsyncpa [#allocation7], 0 }
  0x22   :  { %23 = vsyncpa [#allocation7 + $0x1], 0 }
  0x23   :  { %24 = vsyncpa [#allocation8], 0 }
  0x24   :  { %26 = vsyncpa [#allocation8 + $0x1], 0  ;;  %s691_s2 = smov 0   ;;  %s693_s7 = smov 0  }
  0x25   :  { %s695_s8 = smov 0   ;;  %s697_s9 = smov 0  }
  0x26   :  { %s699_s10 = smov 0   ;;  %s701_s11 = smov 0  }
  0x27 LB: > { %s402_s12 = sadd.s32 4294967295, %s637_s11   ;;  %s403_s13 = sadd.s32 4294967294, %s637_s11   ;;  %s637_s11 = sphi %s701_s11, %s32_s11   ;;  %s633_s10 = sphi %s699_s10, %s988_s10   ;;  %s629_s9 = sphi %s697_s9, %s987_s9   ;;  %s625_s8 = sphi %s695_s8, %s986_s8   ;;  %s621_s7 = sphi %s693_s7, %s985_s7   ;;  %s617_s2 = sphi %s691_s2, %s984_s2  }
  0x28   : > { %s44_s14 = sadd.s32 1, %s633_s10  ;;  %s53_s15 = sadd.s32 1, %s625_s8 }
  0x29   : > { %p46_p13 = scmp.ge.s32.totalorder %s44_s14, 4  ;;  %p60_p0 = scmp.ne.s32.totalorder %s625_s8, %s621_s7 }
  0x2a   : > { %p61_p1 = scmp.eq.s32.totalorder %s637_s11, 0  ;;  %p66_p2 = scmp.ne.s32.totalorder %s621_s7, %s617_s2 }
  0x2b   : > { %s990_s14 = smov (%p46_p13, %s44_s14), 0  ;;  %p67_p4 = scmp.eq.s32.totalorder %s402_s12, 0 }
  0x2c   : > { %p732_p3 = por %p61_p1, %p60_p0  ;;  %s48_s17 = ssub.s32 %s633_s10, %s990_s14 }
  0x2d   : > { %p92_p5 = scmp.eq.s32.totalorder %s402_s12, 3  ;;  %p51_p6 = scmp.eq.s32.totalorder %s48_s17, 0 }
  0x2e   : > { %p738_p7 = por %p67_p4, %p66_p2  ;;  %p98_p9 = scmp.eq.s32.totalorder %s403_s13, 3 }
  0x2f   : > { %p742_p8 = por %p92_p5, %p60_p0  ;;  %p432_p11 = scmp.lt.s32.totalorder %s637_s11, 4 }
  0x30   : > { %s747_s20 = scalar_select %p51_p6, %s625_s8, %s53_s15  }
  0x31   : > { %s974_s19 = scalar_select %p742_p8, 1, 0 }
  0x32   : > { %p749_p10 = por %p98_p9, %p66_p2  ;;  %s118_s22 = sand.u32 1, %s625_s8  }
  0x33   : > { %s406_s23 = sshll.u32 %s118_s22, 6  ;;  %s418_s24 = sshll.u32 %s633_s10, 10 }
  0x34   : > { %s975_s21 = scalar_select %p749_p10, 1, 0 }
  0x35   : > { %s759_s27 = scalar_lea.hbm %s967_s3, %s418_s24  ;;  %s122_s28 = scalar_lea.vmem [#allocation6], %s406_s23 }
  0x36   : > { %s131_s29 = sshll.u32 %s122_s28, 4  ;;  %p765_p12 = pnand %p432_p11, %p732_p3  ;;  %s761_s29 = int_to_ptr.vmem [resolvable:$true] %s131_s29 }
  0x37   : > { %s770_s5 = scalar_lea.sflag [#allocation7], %s118_s22  ;;  %s523_s6 = scalar_lea.hbm %s759_s27, 1024 }
  0x38   : > { %p524_p0 = scmp.ne.s32.totalorder %s759_s27, %s523_s6  ;;  %p525_p1 = pneg %p765_p12 }
  0x39   : > { %s528_s12 = scalar_lea.hbm %s967_s3, 4096  ;;  %p529_p3 = scmp.lt.u32.totalorder %s759_s27, %s967_s3 }
  0x3a   : > { %p526_p2 = pnand %p525_p1, %p524_p0  ;;  %p530_p5 = scmp.lt.u32.totalorder %s528_s12, %s523_s6 }
  0x3b   : > { %p532_p9 = scmp.lt.u32.totalorder %s523_s6, %s759_s27 }
  0x3c   : > { %p527_p4 = pneg %p526_p2  ;;  %p531_p6 = por %p530_p5, %p529_p3 }
  0x3e   : > { %p533_p11 = por %p532_p9, %p531_p6 }
  0x40   : > { %p534_p13 = pnand %p533_p11, %p527_p4 }
  0x42   : > { %537 = shalt.err (!%p534_p13)
}
  0x43   : > { %s538_s16 = scalar_lea.vmem %s761_s29, 1024  ;;  %s642_s17 = smov [#allocation6]  }
  0x44   : > { %p539_p0 = scmp.ne.s32.totalorder %s761_s29, %s538_s16  ;;  %s543_s22 = sshll.u32 %s642_s17, 4  ;;  %s544_s22 = int_to_ptr.vmem [resolvable:$false] %s543_s22 }
  0x45   : > { %s545_s23 = scalar_lea.vmem %s544_s22, 2048  ;;  %p546_p8 = scmp.lt.s32.totalorder %s761_s29, %s544_s22 }
  0x46   : > { %p541_p2 = pnand %p539_p0, %p525_p1  ;;  %p547_p3 = scmp.lt.s32.totalorder %s545_s23, %s538_s16 }
  0x48   : > { %p542_p10 = pneg %p541_p2  ;;  %p548_p5 = por %p547_p3, %p546_p8 }
  0x4a   : > { %p549_p6 = pnand %p548_p5, %p542_p10 }
  0x4c   : > { %552 = shalt.err (!%p549_p6)
}
  0x4d   : > { %s643_s24 = smov 128   ;;  %s644_s25 = smov 8  }
  0x4e   : > { %427 = dma.hbm_to_vmem [thread:$0]  (!%p765_p12), %s759_s27, 1024, %s761_s29, %s770_s5, %s643_s24, %s643_s24, %s644_s25  }
  0x4f   : > { %p139_p13 = scmp.lt.s32.totalorder %s637_s11, 5  ;;  %p977_p1 = scmp.ge.s32.totalorder %s637_s11, 1 }
  0x51   : > { %p140_p4 = pnand %p977_p1, %p139_p13 }
  0x52   : > { %s802_s26 = sand.u32 (!%p140_p4), 1, %s621_s7  }
  0x53   : > { %143 = sbr.rel (%p140_p4) target bundleno = 142 (0x8e), region = 24  ;;  %s410_s28 = sshll.u32 (!%p140_p4), %s802_s26, 6 }
  0x54   : > { %s146_s6 = scalar_lea.sflag (!%p140_p4), [#allocation7], %s802_s26  ;;  %s808_s0 = scalar_lea.vmem (!%p140_p4), [#allocation6], %s410_s28 }
  0x5a   : > { %608 = dma.done.wait (%p738_p7), %s146_s6, 1024  }
  0x5b   : > { %610 = vsyncadd (%p738_p7), %s146_s6, 4294966272  ;;  %v170_v0 = vlaneseq  ;;  %s412_s27 = sshll.u32 %s629_s9, 1  ;;  %s257_s1 = sld [smem:[#allocation5 + %s629_s9]]  ;;  %v258_v9 = vld [vmem:[%s808_s0] sm:$0xff]  ;;  %v259_v13 = vld [vmem:[%s808_s0 + $0x8] sm:$0xff] }
  0x5c   : > { %s190_s29 = sld [smem:[#allocation3 + %s412_s27]]  ;;  %s219_s5 = sadd.s32 1, %s412_s27  ;;  %v260_v17 = vld [vmem:[%s808_s0 + $0x10] sm:$0xff]  ;;  %v261_v20 = vld [vmem:[%s808_s0 + $0x18] sm:$0xff]  ;;  %v262_v23 = vld [vmem:[%s808_s0 + $0x20] sm:$0xff] }
  0x5d   : > { %s191_s30 = sld [smem:[#allocation4 + %s412_s27]]  ;;  %v815_v1 = vshrl.u32 %v170_v0, 7  ;;  %s862_s16 = scalar_lea.vmem [#allocation9], %s410_s28  ;;  %v263_v26 = vld [vmem:[%s808_s0 + $0x28] sm:$0xff]  ;;  %v264_v28 = vld [vmem:[%s808_s0 + $0x30] sm:$0xff]  ;;  %v265_v30 = vld [vmem:[%s808_s0 + $0x38] sm:$0xff] }
  0x5e   : > { %s220_s12 = sld [smem:[#allocation3 + %s219_s5]]  ;;  %s315_s17 = sshll.u32 %s862_s16, 4  ;;  %s910_s17 = int_to_ptr.vmem [resolvable:$true] %s315_s17 }
  0x5f   : > { %s221_s13 = sld [smem:[#allocation4 + %s219_s5]]  ;;  %v172_v2 = vadd.s32 8, %v815_v1  ;;  %v173_v6 = vadd.s32 16, %v815_v1  ;;  %v174_v12 = vadd.s32 24, %v815_v1  ;;  %v175_v15 = vadd.s32 32, %v815_v1  ;;  %s419_s22 = sshll.u32 %s629_s9, 10 }
  0x60   : > { %v176_v18 = vadd.s32 40, %v815_v1  ;;  %v177_v21 = vadd.s32 48, %v815_v1  ;;  %v178_v24 = vadd.s32 56, %v815_v1  ;;  %s916_s25 = scalar_lea.hbm %s968_s4, %s419_s22  ;;  %s300_s9 = scalar_lea.sflag [#allocation8], %s802_s26 }
  0x61   : > { %v843_v10 = vstv %s257_s1  ;;  %s553_s28 = scalar_lea.vmem %s910_s17, 1024  ;;  %p982_p8 = scmp.ne.s32.totalorder %s974_s19, 0 }
  0x62   : > { %v819_v3 = vstv %s190_s29  ;;  %p554_p7 = scmp.ne.s32.totalorder %s910_s17, %s553_s28  ;;  %s645_s6 = smov [#allocation9]  }
  0x63   : > { %s201_s15 = sadd.s32 %s191_s30, %s190_s29  ;;  %vm193_vm0 = vcmp.le.s32.totalorder %v819_v3, %v815_v1  ;;  %vm194_vm1 = vcmp.le.s32.totalorder %v819_v3, %v172_v2  ;;  %vm195_vm12 = vcmp.le.s32.totalorder %v819_v3, %v173_v6  ;;  %s557_s0 = sshll.u32 %s645_s6, 4  ;;  %s558_s0 = int_to_ptr.vmem [resolvable:$false] %s557_s0 }
  0x64   : > { %v823_v4 = vstv %s201_s15  ;;  %v828_v5 = vstv %s220_s12  ;;  %p555_p10 = pnand %p554_p7, %p982_p8  ;;  %s559_s27 = scalar_lea.vmem %s558_s0, 2048 }
  0x65   : > { %vm203_vm2 = vcmp.lt.s32.totalorder %v815_v1, %v823_v4  ;;  %s231_s18 = sadd.s32 %s221_s13, %s220_s12  ;;  %vm204_vm3 = vcmp.lt.s32.totalorder %v172_v2, %v823_v4  ;;  %vm223_vm5 = vcmp.le.s32.totalorder %v828_v5, %v815_v1  ;;  %vm224_vm8 = vcmp.le.s32.totalorder %v828_v5, %v172_v2  ;;  %p560_p9 = scmp.lt.s32.totalorder %s910_s17, %s558_s0 }
  0x66   : > { %vm832_vm4 = vmand %vm193_vm0, %vm203_vm2  ;;  %v838_v8 = vstv %s231_s18  ;;  %vm205_vm13 = vcmp.lt.s32.totalorder %v173_v6, %v823_v4  ;;  %vm225_vm15 = vcmp.le.s32.totalorder %v828_v5, %v173_v6  ;;  %p556_p12 = pneg %p555_p10  ;;  %p561_p11 = scmp.lt.s32.totalorder %s559_s27, %s553_s28 }
  0x67   : > { %vm233_vm6 = vcmp.lt.s32.totalorder %v815_v1, %v838_v8  ;;  %vm845_vm7 = vmand %vm194_vm1, %vm204_vm3  ;;  %vm234_vm9 = vcmp.lt.s32.totalorder %v172_v2, %v838_v8  ;;  %vm235_vm0 = vcmp.lt.s32.totalorder %v173_v6, %v838_v8  ;;  %vm196_vm3 = vcmp.le.s32.totalorder %v819_v3, %v174_v12 }
  0x68   : > { %vm241_vm10 = vmand %vm223_vm5, %vm233_vm6  ;;  %vm226_vm6 = vcmp.le.s32.totalorder %v828_v5, %v174_v12  ;;  %p562_p0 = por %p561_p11, %p560_p9 }
  0x69   : > { %vm249_vm11 = vmor %vm832_vm4, %vm241_vm10  ;;  %vm206_vm4 = vcmp.lt.s32.totalorder %v174_v12, %v823_v4  ;;  %vm197_vm10 = vcmp.le.s32.totalorder %v819_v3, %v175_v15 }
  0x6a   : > { %v283_v14 = vsel %vm249_vm11, %v843_v10, %v258_v9  ;;  %vm242_vm14 = vmand %vm224_vm8, %vm234_vm9  ;;  %vm236_vm8 = vcmp.lt.s32.totalorder %v174_v12, %v838_v8  ;;  %vm207_vm11 = vcmp.lt.s32.totalorder %v175_v15, %v823_v4  ;;  %p563_p2 = pnand %p562_p0, %p556_p12 }
  0x6b   : > { %291 = vst [vmem:[%s862_s16] sm:$0xff] %v283_v14  ;;  %vm250_vm1 = vmor %vm845_vm7, %vm242_vm14  ;;  %vm237_vm14 = vcmp.lt.s32.totalorder %v175_v15, %v838_v8 }
  0x6c   : > { %v284_v16 = vsel %vm250_vm1, %v843_v10, %v259_v13  ;;  %vm213_vm2 = vmand %vm195_vm12, %vm205_vm13  ;;  %vm227_vm13 = vcmp.le.s32.totalorder %v828_v5, %v175_v15  ;;  %vm198_vm1 = vcmp.le.s32.totalorder %v819_v3, %v176_v18 }
  0x6d   : > { %292 = vst [vmem:[%s862_s16 + $0x8] sm:$0xff] %v284_v16  ;;  %vm243_vm5 = vmand %vm225_vm15, %vm235_vm0 }
  0x6e   : > { %vm251_vm9 = vmor %vm213_vm2, %vm243_vm5  ;;  %vm208_vm2 = vcmp.lt.s32.totalorder %v176_v18, %v823_v4  ;;  %vm238_vm5 = vcmp.lt.s32.totalorder %v176_v18, %v838_v8 }
  0x6f   : > { %v285_v19 = vsel %vm251_vm9, %v843_v10, %v260_v17  ;;  %vm214_vm7 = vmand %vm196_vm3, %vm206_vm4  ;;  %vm228_vm4 = vcmp.le.s32.totalorder %v828_v5, %v176_v18  ;;  %vm199_vm9 = vcmp.le.s32.totalorder %v819_v3, %v177_v21 }
  0x70   : > { %293 = vst [vmem:[%s862_s16 + $0x10] sm:$0xff] %v285_v19  ;;  %vm244_vm12 = vmand %vm226_vm6, %vm236_vm8 }
  0x71   : > { %vm252_vm15 = vmor %vm214_vm7, %vm244_vm12  ;;  %vm209_vm7 = vcmp.lt.s32.totalorder %v177_v21, %v823_v4  ;;  %vm239_vm12 = vcmp.lt.s32.totalorder %v177_v21, %v838_v8 }
  0x72   : > { %v286_v22 = vsel %vm252_vm15, %v843_v10, %v261_v20  ;;  %vm215_vm0 = vmand %vm197_vm10, %vm207_vm11  ;;  %vm229_vm11 = vcmp.le.s32.totalorder %v828_v5, %v177_v21  ;;  %vm200_vm15 = vcmp.le.s32.totalorder %v819_v3, %v178_v24 }
  0x73   : > { %294 = vst [vmem:[%s862_s16 + $0x18] sm:$0xff] %v286_v22  ;;  %vm245_vm3 = vmand %vm227_vm13, %vm237_vm14 }
  0x74   : > { %vm253_vm6 = vmor %vm215_vm0, %vm245_vm3  ;;  %vm210_vm0 = vcmp.lt.s32.totalorder %v178_v24, %v823_v4  ;;  %vm240_vm3 = vcmp.lt.s32.totalorder %v178_v24, %v838_v8 }
  0x75   : > { %v287_v25 = vsel %vm253_vm6, %v843_v10, %v262_v23  ;;  %vm216_vm8 = vmand %vm198_vm1, %vm208_vm2  ;;  %vm230_vm2 = vcmp.le.s32.totalorder %v828_v5, %v178_v24 }
  0x76   : > { %295 = vst [vmem:[%s862_s16 + $0x20] sm:$0xff] %v287_v25  ;;  %vm246_vm10 = vmand %vm228_vm4, %vm238_vm5 }
  0x77   : > { %vm254_vm13 = vmor %vm216_vm8, %vm246_vm10 }
  0x78   : > { %v288_v27 = vsel %vm254_vm13, %v843_v10, %v263_v26  ;;  %vm217_vm14 = vmand %vm199_vm9, %vm209_vm7 }
  0x79   : > { %296 = vst [vmem:[%s862_s16 + $0x28] sm:$0xff] %v288_v27  ;;  %vm247_vm1 = vmand %vm229_vm11, %vm239_vm12 }
  0x7a   : > { %vm255_vm4 = vmor %vm217_vm14, %vm247_vm1 }
  0x7b   : > { %v289_v29 = vsel %vm255_vm4, %v843_v10, %v264_v28  ;;  %vm218_vm5 = vmand %vm200_vm15, %vm210_vm0 }
  0x7c   : > { %297 = vst [vmem:[%s862_s16 + $0x30] sm:$0xff] %v289_v29  ;;  %vm248_vm6 = vmand %vm230_vm2, %vm240_vm3 }
  0x7d   : > { %vm256_vm8 = vmor %vm218_vm5, %vm248_vm6 }
  0x7e   : > { %v290_v31 = vsel %vm256_vm8, %v843_v10, %v265_v30 }
  0x7f   : > { %298 = vst [vmem:[%s862_s16 + $0x38] sm:$0xff] %v290_v31 }
  0x80   : > { %566 = shalt.err (!%p563_p2)
}
  0x81   : > { %s567_s29 = scalar_lea.hbm %s916_s25, 1024  ;;  %s571_s1 = scalar_lea.hbm %s968_s4, 4096 }
  0x82   : > { %p568_p3 = scmp.ne.s32.totalorder %s916_s25, %s567_s29  ;;  %p572_p13 = scmp.lt.u32.totalorder %s916_s25, %s968_s4 }
  0x83   : > { %p573_p1 = scmp.lt.u32.totalorder %s571_s1, %s567_s29  ;;  %p575_p7 = scmp.lt.u32.totalorder %s567_s29, %s916_s25 }
  0x84   : > { %p569_p5 = pnand %p568_p3, %p982_p8 }
  0x85   : > { %p574_p4 = por %p573_p1, %p572_p13 }
  0x86   : > { %p570_p6 = pneg %p569_p5 }
  0x87   : > { %p576_p10 = por %p575_p7, %p574_p4 }
  0x89   : > { %p577_p12 = pnand %p576_p10, %p570_p6 }
  0x8b   : > { %580 = shalt.err (!%p577_p12)
}
  0x8c   : > { %s646_s15 = smov 128   ;;  %s647_s18 = smov 8  }
  0x8d   : > { %422 = dma.vmem_to_hbm [thread:$0]  (%p982_p8), %s910_s17, 1024, %s916_s25, %s300_s9, %s646_s15, %s646_s15, %s647_s18  }
  0x8e PF: > { %p433_p9 = scmp.ge.s32.totalorder %s637_s11, 2  ;;  %s330_s16 = sand.u32 1, %s617_s2  }
  0x8f   : > { %p983_p11 = scmp.ne.s32.totalorder %s975_s21, 0  ;;  %s331_s22 = scalar_lea.sflag [#allocation8], %s330_s16 }
  0x91   : > { %p429_p0 = pnand %p433_p9, %p983_p11 }
  0x93   : > { %612 = dma.done.wait (!%p429_p0), %s331_s22, 1024  }
  0x94   : > { %614 = vsyncadd (!%p429_p0), %s331_s22, 4294966272  ;;  %s32_s11 = sadd.s32 1, %s637_s11   ;;  %s984_s2 = smov %s621_s7 }
  0x95   : > { %p29_p2 = scmp.ge.s32.totalorder %s32_s11, 6   ;;  %s985_s7 = smov %s625_s8 }
  0x96   : > { %s986_s8 = smov %s747_s20  ;;  %s987_s9 = smov %s633_s10 }
  0x97   : > { %s988_s10 = smov %s990_s14  ;;  %31 = sbr.rel (!%p29_p2) target bundleno = 39 (0x27), region = 69 }
  0x9e   :  { %336 = vsyncpa [#allocation7], 1 }
  0x9f   :  { %338 = vsyncpa [#allocation7 + $0x1], 1 }
  0xa0   :  { %339 = vsyncpa [#allocation8], 1 }
  0xa1   :  { %341 = vsyncpa [#allocation8 + $0x1], 1 }

</bundles_post_ra>
